<compile_context>
chip_gen: v7x
topology: tpu7x:2x2x1
jax: 0.10.0
libtpu: 0.0.40
codegen_flags: <defaults>
</compile_context>

<pallas_src>
import functools

import jax
import jax.numpy as jnp
from jax.experimental import pallas as pl
from jax.experimental.pallas import tpu as pltpu

_LANES = 128
_SUBLANES = 8
_MIB = 1024 * 1024


def _round_up(a, m):
    return ((a + m - 1) // m) * m


def _detect_chip():
    """Best-effort chip detection; falls back to conservative defaults."""
    num_tc = 1
    is_v5e = False
    try:
        kind = jax.devices()[0].device_kind.lower()
        is_v5e = ("v5 lite" in kind) or ("v5e" in kind) or ("v5litepod" in kind)
        if ("v7" in kind) or ("tpu7" in kind) or ("7x" in kind):
            num_tc = 2  # v7x has 2 TensorCores per chip
    except Exception:
        pass
    return {"num_tc": num_tc, "is_v5e": is_v5e}


def _lambda_kernel(fn, compute_dtype, x_ref, o_ref):
    x = x_ref[...]
    if compute_dtype is not None:
        x = x.astype(compute_dtype)
    y = fn(x)
    # Trace-time sanity check: Lambda-as-kernel only supports shape-preserving fns.
    if y.shape != x.shape:
        raise ValueError(
            "Pallas Lambda only supports elementwise / shape-preserving fns; "
            f"fn mapped a block of shape {x.shape} to {y.shape}"
        )
    o_ref[...] = y.astype(o_ref.dtype)


def _run_slab(fn, x2d, *, tile_bytes, compute_dtype, num_tc, alias):
    """Run fn over a (rows, 128) slab with byte-sized blocks."""
    rows, _ = x2d.shape
    dtype = x2d.dtype
    itemsize = jnp.dtype(dtype).itemsize

    tile_rows = max(_SUBLANES, (int(tile_bytes) // (_LANES * itemsize)))
    tile_rows = max(_SUBLANES, (tile_rows // _SUBLANES) * _SUBLANES)

    if rows <= tile_rows:
        # Single block covering the full extent (allowed even if rows % 8 != 0).
        tr = rows
        # Only split for a second TensorCore on chips that actually have one.
        if num_tc >= 2 and rows > 2 * _SUBLANES:
            tr = max(_SUBLANES, _round_up(pl.cdiv(rows, num_tc), _SUBLANES))
            if tr >= rows:
                tr = rows
    else:
        tr = tile_rows
    grid = (pl.cdiv(rows, tr),)

    block_bytes = tr * _LANES * itemsize
    # 2 operands x 2 double-buffers x block, plus headroom; safe on v5e (128 MiB
    # physical), v6e (128 MiB) and v7x (64 MiB physical).
    vmem_limit = int(min(max(32 * _MIB, 4 * block_bytes + 8 * _MIB), 56 * _MIB))

    n_elems = rows * _LANES
    bytes_accessed = 2 * n_elems * itemsize
    try:
        sample = jax.ShapeDtypeStruct((_SUBLANES, _LANES),
                                      compute_dtype or dtype)
        base = pl.estimate_cost(fn, sample)
        scale = n_elems / float(_SUBLANES * _LANES)
        cost = pl.CostEstimate(
            flops=int(base.flops * scale),
            transcendentals=int(base.transcendentals * scale),
            bytes_accessed=bytes_accessed,
        )
    except Exception:
        cost = pl.CostEstimate(flops=2 * n_elems, transcendentals=0,
                               bytes_accessed=bytes_accessed)

    return pl.pallas_call(
        functools.partial(_lambda_kernel, fn, compute_dtype),
        out_shape=jax.ShapeDtypeStruct((rows, _LANES), dtype),
        grid_spec=pltpu.PrefetchScalarGridSpec(
            num_scalar_prefetch=0,
            grid=grid,
            in_specs=[pl.BlockSpec((tr, _LANES), lambda i: (i, 0))],
            out_specs=pl.BlockSpec((tr, _LANES), lambda i: (i, 0)),
        ),
        compiler_params=pltpu.CompilerParams(
            dimension_semantics=("parallel",),
            vmem_limit_bytes=vmem_limit,
        ),
        cost_estimate=cost,
        input_output_aliases=(alias or {}),
    )(x2d)


def make_pallas_lambda(fn, *, tile_bytes=4 * _MIB,
                       small_bytes_threshold=512 * 1024, donate=False):
    """Returns a callable equivalent to Lambda(fn) for elementwise `fn`.

    The elementwise map runs inside a Pallas kernel on a lane-dense
    (rows, 128) slab; only reshape glue is plain JAX.
    """
    chip = _detect_chip()

    def apply(x):
        orig_shape = x.shape
        orig_dtype = x.dtype
        n = int(x.size)
        itemsize = jnp.dtype(orig_dtype).itemsize

        # Tiny tensors: custom-call overhead + lost XLA fusion dominate.
        if n == 0 or n * itemsize < small_bytes_threshold:
            return fn(x).astype(orig_dtype)

        # Only v5e lacks bf16 VPU/EUP; v6e/v7x compute sub-32-bit floats natively.
        compute_dtype = None
        if (chip["is_v5e"] and jnp.issubdtype(orig_dtype, jnp.floating)
                and itemsize < 4):
            compute_dtype = jnp.float32

        if n % _LANES == 0:
            rows = n // _LANES
            x2d = x.reshape(rows, _LANES)      # pure reshape, no HBM copy
            out2d = _run_slab(fn, x2d, tile_bytes=tile_bytes,
                              compute_dtype=compute_dtype,
                              num_tc=chip["num_tc"],
                              alias=({0: 0} if donate else None))
            return out2d.reshape(orig_shape)

        # Ragged size: 128-aligned prefix through the kernel, <128-element tail
        # in plain JAX (no whole-tensor pad/slice, no fn on padded zeros).
        n_aligned = (n // _LANES) * _LANES
        if n_aligned == 0:
            return fn(x).astype(orig_dtype)
        flat = x.reshape(-1)
        head = flat[:n_aligned].reshape(n_aligned // _LANES, _LANES)
        tail = flat[n_aligned:]
        out_head = _run_slab(fn, head, tile_bytes=tile_bytes,
                             compute_dtype=compute_dtype,
                             num_tc=chip["num_tc"], alias=None)
        if compute_dtype is not None:
            out_tail = fn(tail.astype(compute_dtype)).astype(orig_dtype)
        else:
            out_tail = fn(tail).astype(orig_dtype)
        return jnp.concatenate([out_head.reshape(-1), out_tail]).reshape(orig_shape)

    return apply


if __name__ == "__main__":
    # Example Lambda payload (a common use of Lambda in model code):
    # SiLU-like elementwise map x * sigmoid(x).
    fn = lambda x: x * jax.nn.sigmoid(x)

    key = jax.random.PRNGKey(0)

    # 1) The module's spec-sized input, NCHW (PyTorch conv convention).
    #    Threshold 0 forces the Pallas path so the kernel itself is exercised.
    x_small = jax.random.normal(key, (2, 4, 16, 16), dtype=jnp.float32)
    pallas_lambda_forced = make_pallas_lambda(fn, small_bytes_threshold=0)
    out_small = jax.block_until_ready(pallas_lambda_forced(x_small))
    ref_small = fn(x_small)
    assert out_small.shape == x_small.shape and out_small.dtype == x_small.dtype
    assert jnp.allclose(out_small, ref_small, atol=1e-5, rtol=1e-5)

    # 2) A larger activation-sized input taking the default big-block path:
    #    lane-dense zero-copy factorization, byte-sized blocks.
    k2 = jax.random.fold_in(key, 1)
    x_big = jax.random.normal(k2, (4, 32, 64, 128), dtype=jnp.float32)
    pallas_lambda = make_pallas_lambda(fn)
    out_big = jax.block_until_ready(pallas_lambda(x_big))
    ref_big = fn(x_big)
    assert out_big.shape == x_big.shape and out_big.dtype == x_big.dtype
    assert jnp.allclose(out_big, ref_big, atol=1e-5, rtol=1e-5)

    # 3) An awkward, non-128-divisible shape to exercise the prefix+tail path.
    k3 = jax.random.fold_in(key, 2)
    x_odd = jax.random.normal(k3, (3, 5, 7, 11), dtype=jnp.float32)
    out_odd = jax.block_until_ready(pallas_lambda_forced(x_odd))
    ref_odd = fn(x_odd)
    assert out_odd.shape == x_odd.shape and out_odd.dtype == x_odd.dtype
    assert jnp.allclose(out_odd, ref_odd, atol=1e-5, rtol=1e-5)

    # 4) bf16 input (native compute on v6e/v7x, f32 upcast only on v5e).
    k4 = jax.random.fold_in(key, 3)
    x_bf16 = jax.random.normal(k4, (8, 32, 32, 64), dtype=jnp.bfloat16)
    out_bf16 = jax.block_until_ready(pallas_lambda(x_bf16))
    ref_bf16 = fn(x_bf16.astype(jnp.float32)).astype(jnp.bfloat16)
    assert out_bf16.shape == x_bf16.shape and out_bf16.dtype == x_bf16.dtype
    assert jnp.allclose(out_bf16.astype(jnp.float32),
                        ref_bf16.astype(jnp.float32), atol=2e-2, rtol=2e-2)

    print("KERNEL_OK")
</pallas_src>

<mosaic_0001>
module attributes {stable_mosaic.version = 11 : i64} {
  func.func @_lambda_kernel(%arg0: i32, %arg1: memref<16x128xf32, #tpu.memory_space<vmem>>, %arg2: memref<16x128xf32, #tpu.memory_space<vmem>>) attributes {dimension_semantics = [#tpu.dimension_semantics<parallel>], iteration_bounds = array<i64: 1>, scalar_prefetch = 0 : i64, scratch_operands = 0 : i64, tpu.core_type = #tpu.core_type<tc>, window_params = [{transform_indices = @transform_0, window_bounds = array<i64: 16, 128>}, {transform_indices = @transform_1, window_bounds = array<i64: 16, 128>}]} {
    %c0 = arith.constant 0 : index
    %c0_0 = arith.constant 0 : index
    %0 = vector.load %arg1[%c0, %c0_0] : memref<16x128xf32, #tpu.memory_space<vmem>>, vector<16x128xf32>
    %1 = arith.negf %0 : vector<16x128xf32>
    %2 = math.exp %1 : vector<16x128xf32>
    %cst = arith.constant 1.000000e+00 : f32
    %3 = vector.broadcast %cst : f32 to vector<16x128xf32>
    %4 = arith.addf %3, %2 : vector<16x128xf32>
    %5 = arith.divf %3, %4 : vector<16x128xf32>
    %6 = arith.mulf %0, %5 : vector<16x128xf32>
    %c0_1 = arith.constant 0 : index
    %c0_2 = arith.constant 0 : index
    %7 = vector.load %arg2[%c0_1, %c0_2] : memref<16x128xf32, #tpu.memory_space<vmem>>, vector<16x128xf32>
    tpu.vector_store %arg2[%c0_1, %c0_2], %6 {strides = array<i32>} : memref<16x128xf32, #tpu.memory_space<vmem>>, vector<16x128xf32>,
    return
  }
  func.func @transform_0(%arg0: i32) -> (i32, i32) {
    %c0_i32 = arith.constant 0 : i32
    %c0_i32_0 = arith.constant 0 : i32
    return %arg0, %c0_i32 : i32, i32
  }
  func.func @transform_1(%arg0: i32) -> (i32, i32) {
    %c0_i32 = arith.constant 0 : i32
    %c0_i32_0 = arith.constant 0 : i32
    return %arg0, %c0_i32 : i32, i32
  }
}

</mosaic_0001>

<bundles_post_ra>
// kernel: tpu_custom_call.1
= control target key start
LH: loop header
LB: loop body
LE: loop exit
PB: predicated region body
PF: predicated region fallthrough
CT: control target
= control target key end

     0   :  { %6 = vsyncpa [#allocation3], 0  ;;  %s164_s0 = inlined_call_operand.hbm [shape: f32[16,128], index: 0, kind: input, shape index: {}]   ;;  %s165_s1 = inlined_call_operand.hbm [shape: f32[16,128], index: 1, kind: output, shape index: {}]  }
   0x1   :  { %7 = vsyncpa [#allocation4], 0  ;;  %s120_s6 = smov [#allocation2]   ;;  %s72_s10 = scalar_lea.hbm %s164_s0, 256 }
   0x2   :  { %s13_s7 = sshll.u32 %s120_s6, 4  ;;  %p73_p0 = scmp.ne.s32.totalorder %s164_s0, %s72_s10  ;;  %s14_s7 = int_to_ptr.vmem [resolvable:$true] %s13_s7 }
   0x3   :  { %p76_p1 = scmp.lt.u32.totalorder %s72_s10, %s164_s0 }
   0x5   :  { %p78_p2 = pnand %p76_p1, %p73_p0 }
   0x7   :  { %81 = shalt.err (!%p78_p2)
}
   0x8   :  { %s82_s15 = scalar_lea.vmem %s14_s7, 256  ;;  %p87_p4 = scmp.lt.s32.totalorder %s14_s7, %s14_s7 }
   0x9   :  { %p83_p3 = scmp.ne.s32.totalorder %s14_s7, %s82_s15  ;;  %p88_p5 = scmp.lt.s32.totalorder %s82_s15, %s82_s15 }
   0xb   :  { %p89_p6 = por %p88_p5, %p87_p4 }
   0xd   :  { %p90_p7 = pnand %p89_p6, %p83_p3 }
   0xf   :  { %93 = shalt.err (!%p90_p7)
}
  0x10   :  { %s121_s16 = smov 128   ;;  %s122_s17 = smov 8  }
  0x11   :  { %19 = dma.hbm_to_vmem [thread:$0]  %s164_s0, 256, %s14_s7, [#allocation3], %s121_s16, %s121_s16, %s122_s17  }
  0x12   :  { %116 = dma.done.wait [#allocation3], 256  }
  0x13   :  { %117 = vsyncadd [#allocation3], 4294967040  ;;  %v23_v0 = vld [vmem:[#allocation2] sm:$0xff]  ;;  %v24_v1 = vld [vmem:[#allocation2 + $0x8] sm:$0xff]  ;;  %s123_s20 = smov [#allocation5]  }
  0x14   :  { %v58_v2 = vmul.f32 -1.442695, %v23_v0  ;;  %v59_v3 = vmul.f32 -1.442695, %v24_v1  ;;  %s46_s21 = sshll.u32 %s123_s20, 4  ;;  %s47_s21 = int_to_ptr.vmem [resolvable:$true] %s46_s21 }
  0x15   :  { %s94_s0 = scalar_lea.vmem %s47_s21, 256  ;;  %p99_p9 = scmp.lt.s32.totalorder %s47_s21, %s47_s21 }
  0x16   :  { %64 = vpow2.f32 %v58_v2  ;;  %p95_p8 = scmp.ne.s32.totalorder %s47_s21, %s94_s0  ;;  %p100_p10 = scmp.lt.s32.totalorder %s94_s0, %s94_s0 }
  0x17   :  { %66 = vpow2.f32 %v59_v3 }
  0x18   :  { %p101_p11 = por %p100_p10, %p99_p9 }
  0x1a   :  { %p102_p12 = pnand %p101_p11, %p95_p8 }
  0x20   :  { %v65_v4 = vpop.eup %64 }
  0x21   :  { %v67_v5 = vpop.eup %66  ;;  %v31_v6 = vadd.f32 1.0, %v65_v4 }
  0x22   :  { %v32_v7 = vadd.f32 1.0, %v67_v5 }
  0x23   :  { %68 = vrcp.f32 %v31_v6 }
  0x24   :  { %70 = vrcp.f32 %v32_v7 }
  0x2d   :  { %v69_v8 = vpop.eup %68 }
  0x2e   :  { %v71_v9 = vpop.eup %70  ;;  %v37_v10 = vmul.f32 %v69_v8, %v23_v0 }
  0x2f   :  { %v38_v11 = vmul.f32 %v71_v9, %v24_v1 }
  0x30   :  { %39 = vst [vmem:[#allocation5] sm:$0xff] %v37_v10 }
  0x31   :  { %40 = vst [vmem:[#allocation5 + $0x8] sm:$0xff] %v38_v11 }
  0x32   :  { %105 = shalt.err (!%p102_p12)
}
  0x33   :  { %s106_s24 = scalar_lea.hbm %s165_s1, 256 }
  0x34   :  { %p107_p13 = scmp.ne.s32.totalorder %s165_s1, %s106_s24  ;;  %p110_p0 = scmp.lt.u32.totalorder %s106_s24, %s165_s1 }
  0x36   :  { %p112_p1 = pnand %p110_p0, %p107_p13 }
  0x38   :  { %115 = shalt.err (!%p112_p1)
}
  0x39   :  { %52 = dma.vmem_to_hbm [thread:$0]  %s47_s21, 256, %s165_s1, [#allocation4], %s121_s16, %s121_s16, %s122_s17  }
  0x3a   :  { %118 = dma.done.wait [#allocation4], 256  }
  0x3b   :  { %119 = vsyncadd [#allocation4], 4294967040 }
  0x3c   :  { %56 = vsyncpa [#allocation3], 1 }
  0x3d   :  { %57 = vsyncpa [#allocation4], 1 }

</bundles_post_ra>
